<compile_context>
chip_gen: v5e
topology: v5e:2x2
jax: 0.10.0
libtpu: 0.0.40
codegen_flags: <defaults>
</compile_context>

<pallas_src>
import jax
import jax.numpy as jnp
from jax.experimental import pallas as pl
from jax.experimental.pallas import tpu as pltpu


def _affine_kernel(w_ref, b_ref, x_ref, o_ref):
    # w_ref / b_ref: SMEM f32 scalars (shape (1,)); x_ref / o_ref: VMEM tiles.
    w = w_ref[0]
    b = b_ref[0]
    xf = x_ref[...].astype(jnp.float32)   # no-op for f32 inputs; VPU filler under DMA
    o_ref[...] = (xf * w + b).astype(o_ref.dtype)


def _round_up(v, m):
    return ((v + m - 1) // m) * m


_LANE_CANDIDATES = (1024, 512, 256, 128)
_MAX_TILE_BYTES = 4 << 20      # ~4 MiB per tile (in input dtype): HBM-roofline sweet spot
_VMEM_LIMIT_BYTES = 32 << 20   # headroom for double-buffered in/out tiles (binding on v5e)
_MIN_PALLAS_BYTES = 256 << 10  # below this, fused XLA elementwise wins (launch overhead)


def _affine_jnp(x, w_s, b_s):
    # Fused XLA elementwise fallback — roofline-optimal for tiny / ragged sizes.
    return (x.astype(jnp.float32) * w_s[0] + b_s[0]).astype(x.dtype)


def spatial_interpolation(x, weight, bias):
    """y = x * weight[0, 0] + bias[0]  (== nn.Linear(1, 1) applied to last dim == 1)."""
    assert x.shape[-1] == 1, "SpatialInterpolation expects last dim == 1"
    orig_shape = x.shape
    n = x.size
    dtype = x.dtype
    itemsize = jnp.dtype(dtype).itemsize

    w_s = weight.reshape(1).astype(jnp.float32)
    b_s = bias.reshape(1).astype(jnp.float32)

    if n == 0:
        return jnp.zeros(orig_shape, dtype=dtype)

    # Tiny inputs or sizes not divisible by 128: skip Pallas entirely. This
    # avoids both the pallas_call launch overhead and any pad/concat HBM
    # round trip for ragged tails.
    if n * itemsize < _MIN_PALLAS_BYTES or n % 128 != 0:
        return _affine_jnp(x, w_s, b_s)

    # Lane selection: widest candidate giving rows >= 8; prefer rows % 8 == 0
    # (full, unmasked (8, 128) vregs). Any lane >= 128 is already lane-dense.
    lane = None
    for cand in _LANE_CANDIDATES:
        if n % (cand * 8) == 0 and n >= cand * 8:
            lane = cand
            break
    if lane is None:
        for cand in _LANE_CANDIDATES:
            if n % cand == 0 and (n // cand) >= 8:
                lane = cand
                break
    if lane is None:
        return _affine_jnp(x, w_s, b_s)

    rows = n // lane
    x2d = x.reshape(rows, lane)

    # Dtype-aware ~4 MiB tiles, rows a multiple of 8 (sublanes). Cap so the
    # grid has >= 2 steps: on v7x the "parallel" axis is sharded across the
    # two TensorCores, so a single-step grid would leave one TC idle.
    max_rows_per_tile = max(8, (_MAX_TILE_BYTES // (lane * itemsize)) // 8 * 8)
    half_rows = _round_up(pl.cdiv(rows, 2), 8)
    tile_r = max(8, min(max_rows_per_tile, half_rows))
    grid = (pl.cdiv(rows, tile_r),)

    out2d = pl.pallas_call(
        _affine_kernel,
        out_shape=jax.ShapeDtypeStruct((rows, lane), dtype),
        grid=grid,
        in_specs=[
            pl.BlockSpec(memory_space=pltpu.MemorySpace.SMEM),   # weight scalar (f32)
            pl.BlockSpec(memory_space=pltpu.MemorySpace.SMEM),   # bias scalar (f32)
            pl.BlockSpec((tile_r, lane), lambda i: (i, 0)),      # x row tile
        ],
        out_specs=pl.BlockSpec((tile_r, lane), lambda i: (i, 0)),
        compiler_params=pltpu.CompilerParams(
            dimension_semantics=("parallel",),     # both v7x TCs stream the grid
            vmem_limit_bytes=_VMEM_LIMIT_BYTES,    # keep 4 MiB tiles legal on v5e too
        ),
        cost_estimate=pl.CostEstimate(
            flops=2 * n, transcendentals=0, bytes_accessed=2 * n * itemsize),
    )(w_s, b_s, x2d)

    return out2d.reshape(orig_shape)


if __name__ == "__main__":
    key = jax.random.PRNGKey(0)
    kx, kw, kb = jax.random.split(key, 3)

    # Deterministic parameter init mimicking nn.Linear(1, 1):
    # weight ~ U(-1/sqrt(in_features), 1/sqrt(in_features)) = U(-1, 1), same for bias.
    weight = jax.random.uniform(kw, (1, 1), jnp.float32, minval=-1.0, maxval=1.0)
    bias = jax.random.uniform(kb, (1,), jnp.float32, minval=-1.0, maxval=1.0)

    def ref_fn(x):
        return x * weight[0, 0] + bias[0]

    # 1) Tiny input consistent with the forward (last dim = 1): fused-XLA path.
    x1 = jax.random.normal(kx, (2, 4, 16, 1), jnp.float32)
    o1 = jax.block_until_ready(spatial_interpolation(x1, weight, bias))
    assert o1.shape == x1.shape and jnp.allclose(o1, ref_fn(x1), atol=1e-6), "tiny path"

    # 2) Non-128-divisible size: fused-XLA fallback (no pad-copy round trip).
    x2 = jax.random.normal(kx, (3, 5, 9, 1), jnp.float32)
    o2 = jax.block_until_ready(spatial_interpolation(x2, weight, bias))
    assert o2.shape == x2.shape and jnp.allclose(o2, ref_fn(x2), atol=1e-6), "ragged path"

    # 3) Pallas path, lane=1024, rows=64, 2-step parallel grid (both v7x TCs).
    x3 = jax.random.normal(kx, (16, 16, 256, 1), jnp.float32)
    o3 = jax.block_until_ready(spatial_interpolation(x3, weight, bias))
    assert o3.shape == x3.shape and jnp.allclose(o3, ref_fn(x3), atol=1e-6), "pallas even"

    # 4) Pallas path with a partial (masked) edge block: lane=128, rows=520.
    x4 = jax.random.normal(kx, (8, 65, 128, 1), jnp.float32)
    o4 = jax.block_until_ready(spatial_interpolation(x4, weight, bias))
    assert o4.shape == x4.shape and jnp.allclose(o4, ref_fn(x4), atol=1e-6), "pallas edge"

    print("KERNEL_OK")
</pallas_src>

<mosaic_0001>
module attributes {stable_mosaic.version = 11 : i64} {
  func.func @_affine_kernel(%arg0: i32, %arg1: memref<1xf32, #tpu.memory_space<smem>>, %arg2: memref<1xf32, #tpu.memory_space<smem>>, %arg3: memref<32x1024xf32, #tpu.memory_space<vmem>>, %arg4: memref<32x1024xf32, #tpu.memory_space<vmem>>) attributes {dimension_semantics = [#tpu.dimension_semantics<parallel>], iteration_bounds = array<i64: 2>, scalar_prefetch = 0 : i64, scratch_operands = 0 : i64, tpu.core_type = #tpu.core_type<tc>, window_params = [{transform_indices = @transform_0, window_bounds = array<i64: 1>}, {transform_indices = @transform_1, window_bounds = array<i64: 1>}, {transform_indices = @transform_2, window_bounds = array<i64: 32, 1024>}, {transform_indices = @transform_3, window_bounds = array<i64: 32, 1024>}]} {
    %c0 = arith.constant 0 : index
    %0 = memref.load %arg1[%c0] : memref<1xf32, #tpu.memory_space<smem>>
    %c0_0 = arith.constant 0 : index
    %1 = memref.load %arg2[%c0_0] : memref<1xf32, #tpu.memory_space<smem>>
    %c0_1 = arith.constant 0 : index
    %c0_2 = arith.constant 0 : index
    %2 = vector.load %arg3[%c0_1, %c0_2] : memref<32x1024xf32, #tpu.memory_space<vmem>>, vector<32x1024xf32>
    %3 = vector.broadcast %0 : f32 to vector<32x1024xf32>
    %4 = arith.mulf %2, %3 : vector<32x1024xf32>
    %5 = vector.broadcast %1 : f32 to vector<32x1024xf32>
    %6 = arith.addf %4, %5 : vector<32x1024xf32>
    %c0_3 = arith.constant 0 : index
    %c0_4 = arith.constant 0 : index
    %7 = vector.load %arg4[%c0_3, %c0_4] : memref<32x1024xf32, #tpu.memory_space<vmem>>, vector<32x1024xf32>
    tpu.vector_store %arg4[%c0_3, %c0_4], %6 {strides = array<i32>} : memref<32x1024xf32, #tpu.memory_space<vmem>>, vector<32x1024xf32>,
    return
  }
  func.func @transform_0(%arg0: i32) -> i32 {
    %c0_i32 = arith.constant 0 : i32
    %c0_i32_0 = arith.constant 0 : i32
    return %c0_i32 : i32
  }
  func.func @transform_1(%arg0: i32) -> i32 {
    %c0_i32 = arith.constant 0 : i32
    %c0_i32_0 = arith.constant 0 : i32
    return %c0_i32 : i32
  }
  func.func @transform_2(%arg0: i32) -> (i32, i32) {
    %c0_i32 = arith.constant 0 : i32
    %c0_i32_0 = arith.constant 0 : i32
    return %arg0, %c0_i32 : i32, i32
  }
  func.func @transform_3(%arg0: i32) -> (i32, i32) {
    %c0_i32 = arith.constant 0 : i32
    %c0_i32_0 = arith.constant 0 : i32
    return %arg0, %c0_i32 : i32, i32
  }
}

</mosaic_0001>

<bundles_post_ra>
// kernel: tpu_custom_call.1
= control target key start
LH: loop header
LB: loop body
LE: loop exit
PB: predicated region body
PF: predicated region fallthrough
CT: control target
= control target key end

     0   :  { %s884_s0 = inlined_call_operand.<no memory space> [shape: f32[1], index: 0, kind: input, shape index: {}]   ;;  %s885_s1 = inlined_call_operand.<no memory space> [shape: f32[1], index: 1, kind: input, shape index: {}]   ;;  %s886_s2 = inlined_call_operand.hbm [shape: f32[64,1024], index: 2, kind: input, shape index: {}]   ;;  %s887_s3 = inlined_call_operand.hbm [shape: f32[64,1024], index: 3, kind: output, shape index: {}]  }
   0x1   :  { %8 = sst [smem:[#allocation2]] %s884_s0 }
   0x2   :  { %9 = sst [smem:[#allocation3]] %s885_s1 }
   0x3   :  { %10 = vsyncpa [#allocation5], 0 }
   0x4   :  { %12 = vsyncpa [#allocation5 + $0x1], 0 }
   0x5   :  { %13 = vsyncpa [#allocation6], 0 }
   0x6   :  { %15 = vsyncpa [#allocation6 + $0x1], 0  ;;  %s616_s16 = smov 0   ;;  %s618_s17 = smov 0  }
   0x7   :  { %s620_s18 = smov 0   ;;  %s622_s19 = smov 0  }
   0x8 LB: > { %s637_s0 = sadd.s32 4294967295, %s584_s19   ;;  %s418_s1 = sadd.s32 4294967294, %s584_s19   ;;  %s584_s19 = sphi %s622_s19, %s897_s19   ;;  %s580_s18 = sphi %s620_s18, %s896_s18   ;;  %s576_s17 = sphi %s618_s17, %s895_s17   ;;  %s572_s16 = sphi %s616_s16, %s894_s16  }
   0x9   : > { %s641_s20 = sadd.s32 1, %s584_s19   ;;  %s70_s21 = sadd.s32 1, %s580_s18 }
   0xa   : > { %s67_s22 = ssub.s32 %s584_s19, %s641_s20  ;;  %p77_p0 = scmp.ne.s32.totalorder %s580_s18, %s576_s17 }
   0xb   : > { %p68_p1 = scmp.eq.s32.totalorder %s67_s22, 0  ;;  %p78_p2 = scmp.eq.s32.totalorder %s584_s19, 0 }
   0xc   : > { %p83_p3 = scmp.ne.s32.totalorder %s576_s17, %s572_s16  ;;  %p84_p4 = scmp.eq.s32.totalorder %s637_s0, 0 }
   0xd   : > { %s653_s23 = scalar_select %p68_p1, %s580_s18, %s70_s21  }
   0xe   : > { %p655_p5 = por %p78_p2, %p77_p0  ;;  %p659_p6 = por %p84_p4, %p83_p3 }
   0xf   : > { %p107_p7 = scmp.eq.s32.totalorder %s637_s0, 1  ;;  %p113_p8 = scmp.eq.s32.totalorder %s418_s1, 1 }
  0x10   : > { %p450_p10 = scmp.lt.s32.totalorder %s584_s19, 2  ;;  %s139_s28 = sand.u32 1, %s580_s18  }
  0x11   : > { %p666_p11 = por %p107_p7, %p77_p0  ;;  %p670_p12 = por %p113_p8, %p83_p3 }
  0x12   : > { %s435_s29 = sshll.u32 %s584_s19, 8  ;;  %s421_s30 = sshll.u32 %s139_s28, 8 }
  0x13   : > { %s149_s6 = scalar_lea.hbm %s886_s2, %s435_s29  ;;  %s143_s8 = scalar_lea.vmem [#allocation4], %s421_s30 }
  0x14   : > { %s150_s7 = sshll.u32 %s149_s6, 4  ;;  %s152_s9 = sshll.u32 %s143_s8, 4  ;;  %s151_s7 = int_to_ptr.hbm [resolvable:$true] %s150_s7  ;;  %s153_s9 = int_to_ptr.vmem [resolvable:$true] %s152_s9 }
  0x15   : > { %p681_p13 = pnand %p450_p10, %p655_p5  ;;  %p425_p0 = scmp.ge.s32.totalorder %s584_s19, 1 }
  0x16   : > { %p160_p1 = scmp.lt.s32.totalorder %s584_s19, 3  ;;  %s140_s11 = scalar_lea.sflag [#allocation5], %s139_s28 }
  0x17   : > { %s488_s12 = sshra.s32 %s151_s7, 4  ;;  %p492_p3 = pneg %p681_p13  ;;  %s489_s12 = int_to_ptr.hbm [resolvable:$true] %s488_s12 }
  0x18   : > { %s490_s13 = scalar_lea.hbm %s489_s12, 256  ;;  %s495_s1 = scalar_lea.hbm %s886_s2, 512 }
  0x19   : > { %p491_p2 = scmp.ne.s32.totalorder %s489_s12, %s490_s13  ;;  %p496_p5 = scmp.lt.s32.totalorder %s489_s12, %s886_s2 }
  0x1a   : > { %p497_p8 = scmp.lt.s32.totalorder %s495_s1, %s490_s13 }
  0x1b   : > { %p493_p4 = pnand %p492_p3, %p491_p2 }
  0x1c   : > { %p498_p10 = por %p497_p8, %p496_p5 }
  0x1d   : > { %p494_p7 = pneg %p493_p4 }
  0x1f   : > { %p499_p9 = pnand %p498_p10, %p494_p7 }
  0x21   : > { %502 = shalt.err (!%p499_p9)
}
  0x22   : > { %s586_s24 = smov 1024   ;;  %s587_s28 = smov 64  }
  0x23   : > { %445 = dma.hbm_to_vmem [thread:$0]  (!%p681_p13), %s151_s7, 4096, %s153_s9, %s140_s11, %s586_s24, %s586_s24, %s587_s28  }
  0x24   : > { %p161_p2 = pnand %p425_p0, %p160_p1 }
  0x25   : > { %s702_s29 = sand.u32 (!%p161_p2), 1, %s576_s17  }
  0x26   : > { %164 = sbr.rel (%p161_p2) target bundleno = 90 (0x5a), region = 32  ;;  %s426_s30 = sshll.u32 (!%p161_p2), %s702_s29, 8 }
  0x27   : > { %s167_s4 = scalar_lea.sflag (!%p161_p2), [#allocation5], %s702_s29  ;;  %s708_s5 = scalar_lea.vmem (!%p161_p2), [#allocation4], %s426_s30 }
  0x2b   : > { %563 = dma.done.wait (%p659_p6), %s167_s4, 4096  }
  0x2c   : > { %565 = vsyncadd (%p659_p6), %s167_s4, 4294963200  ;;  %s196_s6 = sld [smem:[#allocation2]]  ;;  %v198_v0 = vld [vmem:[%s708_s5] sm:$0xff]  ;;  %v199_v2 = vld [vmem:[%s708_s5 + $0x8] sm:$0xff]  ;;  %s743_s25 = scalar_lea.vmem [#allocation7], %s426_s30 }
  0x2d   : > { %s197_s7 = sld [smem:[#allocation3]]  ;;  %v200_v3 = vld [vmem:[%s708_s5 + $0x10] sm:$0xff]  ;;  %v201_v8 = vld [vmem:[%s708_s5 + $0x18] sm:$0xff]  ;;  %v202_v9 = vld [vmem:[%s708_s5 + $0x20] sm:$0xff]  ;;  %s437_s8 = sshll.u32 %s637_s0, 8 }
  0x2e   : > { %v203_v10 = vld [vmem:[%s708_s5 + $0x28] sm:$0xff]  ;;  %v204_v14 = vld [vmem:[%s708_s5 + $0x30] sm:$0xff]  ;;  %v205_v15 = vld [vmem:[%s708_s5 + $0x38] sm:$0xff]  ;;  %s341_s10 = scalar_lea.hbm %s887_s3, %s437_s8  ;;  %s342_s11 = sshll.u32 %s743_s25, 4  ;;  %s343_s11 = int_to_ptr.vmem [resolvable:$true] %s342_s11 }
  0x2f   : > { %v206_v16 = vld [vmem:[%s708_s5 + $0x40] sm:$0xff]  ;;  %v207_v21 = vld [vmem:[%s708_s5 + $0x48] sm:$0xff]  ;;  %v208_v24 = vld [vmem:[%s708_s5 + $0x50] sm:$0xff]  ;;  %s344_s12 = sshll.u32 %s341_s10, 4  ;;  %s329_s13 = scalar_lea.sflag [#allocation6], %s702_s29  ;;  %s345_s12 = int_to_ptr.hbm [resolvable:$true] %s344_s12 }
  0x30   : > { %v209_v27 = vld [vmem:[%s708_s5 + $0x58] sm:$0xff]  ;;  %v210_v30 = vld [vmem:[%s708_s5 + $0x60] sm:$0xff]  ;;  %v211_v33 = vld [vmem:[%s708_s5 + $0x68] sm:$0xff]  ;;  %s532_s14 = sshra.s32 %s345_s12, 4  ;;  %s538_s22 = scalar_lea.hbm %s887_s3, 512  ;;  %s533_s14 = int_to_ptr.hbm [resolvable:$true] %s532_s14 }
  0x31   : > { %v212_v36 = vld [vmem:[%s708_s5 + $0x70] sm:$0xff]  ;;  %v213_v39 = vld [vmem:[%s708_s5 + $0x78] sm:$0xff]  ;;  %v214_v42 = vld [vmem:[%s708_s5 + $0x80] sm:$0xff]  ;;  %s534_s15 = scalar_lea.hbm %s533_s14, 256  ;;  %p539_p0 = scmp.lt.s32.totalorder %s533_s14, %s887_s3 }
  0x32   : > { %v715_v1 = vstv %s196_s6  ;;  %v215_v45 = vld [vmem:[%s708_s5 + $0x88] sm:$0xff]  ;;  %v216_v48 = vld [vmem:[%s708_s5 + $0x90] sm:$0xff]  ;;  %v217_v51 = vld [vmem:[%s708_s5 + $0x98] sm:$0xff]  ;;  %p535_p6 = scmp.ne.s32.totalorder %s533_s14, %s534_s15  ;;  %p540_p1 = scmp.lt.s32.totalorder %s538_s22, %s534_s15 }
  0x33   : > { %v231_v4 = vmul.f32 %v715_v1, %v198_v0  ;;  %v720_v5 = vstv %s197_s7  ;;  %v232_v6 = vmul.f32 %v715_v1, %v199_v2  ;;  %v233_v7 = vmul.f32 %v715_v1, %v200_v3  ;;  %v218_v54 = vld [vmem:[%s708_s5 + $0xa0] sm:$0xff]  ;;  %v219_v57 = vld [vmem:[%s708_s5 + $0xa8] sm:$0xff]  ;;  %v220_v60 = vld [vmem:[%s708_s5 + $0xb0] sm:$0xff] }
  0x34   : > { %v234_v11 = vmul.f32 %v715_v1, %v201_v8  ;;  %v235_v12 = vmul.f32 %v715_v1, %v202_v9  ;;  %v236_v13 = vmul.f32 %v715_v1, %v203_v10  ;;  %v237_v20 = vmul.f32 %v715_v1, %v204_v14  ;;  %v221_v63 = vld [vmem:[%s708_s5 + $0xb8] sm:$0xff]  ;;  %v222_v3 = vld [vmem:[%s708_s5 + $0xc0] sm:$0xff]  ;;  %v224_v10 = vld [vmem:[%s708_s5 + $0xd0] sm:$0xff]  ;;  %p536_p9 = pnand %p535_p6, %p666_p11  ;;  %p541_p3 = por %p540_p1, %p539_p0 }
  0x35   : > { %v264_v17 = vadd.f32 %v720_v5, %v231_v4  ;;  %v265_v18 = vadd.f32 %v720_v5, %v232_v6  ;;  %v266_v19 = vadd.f32 %v720_v5, %v233_v7  ;;  %v238_v23 = vmul.f32 %v715_v1, %v205_v15  ;;  %v223_v7 = vld [vmem:[%s708_s5 + $0xc8] sm:$0xff] }
  0x36   : > { %v267_v22 = vadd.f32 %v720_v5, %v234_v11  ;;  %v268_v25 = vadd.f32 %v720_v5, %v235_v12  ;;  %v239_v26 = vmul.f32 %v715_v1, %v206_v16  ;;  %v269_v28 = vadd.f32 %v720_v5, %v236_v13  ;;  %v225_v13 = vld [vmem:[%s708_s5 + $0xd8] sm:$0xff]  ;;  %v226_v16 = vld [vmem:[%s708_s5 + $0xe0] sm:$0xff]  ;;  %p537_p13 = pneg %p536_p9 }
  0x37   : > { %296 = vst [vmem:[%s743_s25] sm:$0xff] %v264_v17  ;;  %v240_v29 = vmul.f32 %v715_v1, %v207_v21  ;;  %v270_v31 = vadd.f32 %v720_v5, %v237_v20  ;;  %v241_v32 = vmul.f32 %v715_v1, %v208_v24  ;;  %v271_v34 = vadd.f32 %v720_v5, %v238_v23 }
  0x38   : > { %297 = vst [vmem:[%s743_s25 + $0x8] sm:$0xff] %v265_v18  ;;  %v242_v35 = vmul.f32 %v715_v1, %v209_v27  ;;  %v272_v37 = vadd.f32 %v720_v5, %v239_v26  ;;  %v243_v38 = vmul.f32 %v715_v1, %v210_v30  ;;  %v244_v41 = vmul.f32 %v715_v1, %v211_v33  ;;  %p542_p4 = pnand %p541_p3, %p537_p13 }
  0x39   : > { %298 = vst [vmem:[%s743_s25 + $0x10] sm:$0xff] %v266_v19  ;;  %v273_v40 = vadd.f32 %v720_v5, %v240_v29  ;;  %v274_v43 = vadd.f32 %v720_v5, %v241_v32  ;;  %v245_v44 = vmul.f32 %v715_v1, %v212_v36  ;;  %v246_v47 = vmul.f32 %v715_v1, %v213_v39  ;;  %v227_v19 = vld [vmem:[%s708_s5 + $0xe8] sm:$0xff] }
  0x3a   : > { %299 = vst [vmem:[%s743_s25 + $0x18] sm:$0xff] %v267_v22  ;;  %v275_v46 = vadd.f32 %v720_v5, %v242_v35  ;;  %v276_v49 = vadd.f32 %v720_v5, %v243_v38  ;;  %v247_v50 = vmul.f32 %v715_v1, %v214_v42  ;;  %v277_v52 = vadd.f32 %v720_v5, %v244_v41  ;;  %v228_v22 = vld [vmem:[%s708_s5 + $0xf0] sm:$0xff] }
  0x3b   : > { %300 = vst [vmem:[%s743_s25 + $0x20] sm:$0xff] %v268_v25  ;;  %v248_v53 = vmul.f32 %v715_v1, %v215_v45  ;;  %v278_v55 = vadd.f32 %v720_v5, %v245_v44  ;;  %v249_v56 = vmul.f32 %v715_v1, %v216_v48  ;;  %v279_v58 = vadd.f32 %v720_v5, %v246_v47  ;;  %v229_v25 = vld [vmem:[%s708_s5 + $0xf8] sm:$0xff] }
  0x3c   : > { %301 = vst [vmem:[%s743_s25 + $0x28] sm:$0xff] %v269_v28  ;;  %v250_v59 = vmul.f32 %v715_v1, %v217_v51  ;;  %v280_v61 = vadd.f32 %v720_v5, %v247_v50  ;;  %v251_v62 = vmul.f32 %v715_v1, %v218_v54  ;;  %v252_v2 = vmul.f32 %v715_v1, %v219_v57 }
  0x3d   : > { %302 = vst [vmem:[%s743_s25 + $0x30] sm:$0xff] %v270_v31  ;;  %v281_v0 = vadd.f32 %v720_v5, %v248_v53  ;;  %v282_v4 = vadd.f32 %v720_v5, %v249_v56  ;;  %v253_v6 = vmul.f32 %v715_v1, %v220_v60  ;;  %v254_v9 = vmul.f32 %v715_v1, %v221_v63 }
  0x3e   : > { %303 = vst [vmem:[%s743_s25 + $0x38] sm:$0xff] %v271_v34  ;;  %v283_v8 = vadd.f32 %v720_v5, %v250_v59  ;;  %v284_v11 = vadd.f32 %v720_v5, %v251_v62  ;;  %v255_v12 = vmul.f32 %v715_v1, %v222_v3  ;;  %v285_v14 = vadd.f32 %v720_v5, %v252_v2 }
  0x3f   : > { %304 = vst [vmem:[%s743_s25 + $0x40] sm:$0xff] %v272_v37  ;;  %v256_v15 = vmul.f32 %v715_v1, %v223_v7  ;;  %v286_v17 = vadd.f32 %v720_v5, %v253_v6  ;;  %v257_v18 = vmul.f32 %v715_v1, %v224_v10  ;;  %v287_v20 = vadd.f32 %v720_v5, %v254_v9 }
  0x40   : > { %305 = vst [vmem:[%s743_s25 + $0x48] sm:$0xff] %v273_v40  ;;  %v258_v21 = vmul.f32 %v715_v1, %v225_v13  ;;  %v288_v23 = vadd.f32 %v720_v5, %v255_v12  ;;  %v259_v24 = vmul.f32 %v715_v1, %v226_v16  ;;  %v260_v27 = vmul.f32 %v715_v1, %v227_v19 }
  0x41   : > { %306 = vst [vmem:[%s743_s25 + $0x50] sm:$0xff] %v274_v43  ;;  %v289_v26 = vadd.f32 %v720_v5, %v256_v15  ;;  %v290_v28 = vadd.f32 %v720_v5, %v257_v18  ;;  %v261_v29 = vmul.f32 %v715_v1, %v228_v22  ;;  %v262_v31 = vmul.f32 %v715_v1, %v229_v25 }
  0x42   : > { %307 = vst [vmem:[%s743_s25 + $0x58] sm:$0xff] %v275_v46  ;;  %v291_v30 = vadd.f32 %v720_v5, %v258_v21  ;;  %v292_v32 = vadd.f32 %v720_v5, %v259_v24  ;;  %v293_v33 = vadd.f32 %v720_v5, %v260_v27 }
  0x43   : > { %308 = vst [vmem:[%s743_s25 + $0x60] sm:$0xff] %v276_v49  ;;  %v294_v34 = vadd.f32 %v720_v5, %v261_v29  ;;  %v295_v35 = vadd.f32 %v720_v5, %v262_v31 }
  0x44   : > { %309 = vst [vmem:[%s743_s25 + $0x68] sm:$0xff] %v277_v52 }
  0x45   : > { %310 = vst [vmem:[%s743_s25 + $0x70] sm:$0xff] %v278_v55 }
  0x46   : > { %311 = vst [vmem:[%s743_s25 + $0x78] sm:$0xff] %v279_v58 }
  0x47   : > { %312 = vst [vmem:[%s743_s25 + $0x80] sm:$0xff] %v280_v61 }
  0x48   : > { %313 = vst [vmem:[%s743_s25 + $0x88] sm:$0xff] %v281_v0 }
  0x49   : > { %314 = vst [vmem:[%s743_s25 + $0x90] sm:$0xff] %v282_v4 }
  0x4a   : > { %315 = vst [vmem:[%s743_s25 + $0x98] sm:$0xff] %v283_v8 }
  0x4b   : > { %316 = vst [vmem:[%s743_s25 + $0xa0] sm:$0xff] %v284_v11 }
  0x4c   : > { %317 = vst [vmem:[%s743_s25 + $0xa8] sm:$0xff] %v285_v14 }
  0x4d   : > { %318 = vst [vmem:[%s743_s25 + $0xb0] sm:$0xff] %v286_v17 }
  0x4e   : > { %319 = vst [vmem:[%s743_s25 + $0xb8] sm:$0xff] %v287_v20 }
  0x4f   : > { %320 = vst [vmem:[%s743_s25 + $0xc0] sm:$0xff] %v288_v23 }
  0x50   : > { %321 = vst [vmem:[%s743_s25 + $0xc8] sm:$0xff] %v289_v26 }
  0x51   : > { %322 = vst [vmem:[%s743_s25 + $0xd0] sm:$0xff] %v290_v28 }
  0x52   : > { %323 = vst [vmem:[%s743_s25 + $0xd8] sm:$0xff] %v291_v30 }
  0x53   : > { %324 = vst [vmem:[%s743_s25 + $0xe0] sm:$0xff] %v292_v32 }
  0x54   : > { %325 = vst [vmem:[%s743_s25 + $0xe8] sm:$0xff] %v293_v33 }
  0x55   : > { %326 = vst [vmem:[%s743_s25 + $0xf0] sm:$0xff] %v294_v34 }
  0x56   : > { %327 = vst [vmem:[%s743_s25 + $0xf8] sm:$0xff] %v295_v35 }
  0x57   : > { %545 = shalt.err (!%p542_p4)
}
  0x58   : > { %s588_s29 = smov 1024   ;;  %s589_s30 = smov 64  }
  0x59   : > { %440 = dma.vmem_to_hbm [thread:$0]  (%p666_p11), %s343_s11, 4096, %s345_s12, %s329_s13, %s588_s29, %s588_s29, %s589_s30  }
  0x5a PF: > { %s359_s4 = sand.u32 1, %s572_s16   ;;  %p893_p7 = scmp.ge.s32.totalorder %s584_s19, 2 }
  0x5b   : > { %s360_s5 = scalar_lea.sflag [#allocation6], %s359_s4 }
  0x5c   : > { %p447_p5 = pnand %p893_p7, %p670_p12 }
  0x5e   : > { %p448_p8 = pneg %p447_p5 }
  0x60   : > { %567 = dma.done.wait (%p448_p8), %s360_s5, 4096  }
  0x61   : > { %569 = vsyncadd (%p448_p8), %s360_s5, 4294963200  ;;  %p18_p10 = scmp.ge.s32.totalorder %s641_s20, 4   ;;  %s894_s16 = smov %s576_s17 }
  0x62   : > { %s895_s17 = smov %s580_s18  ;;  %s896_s18 = smov %s653_s23 }
  0x63   : > { %s897_s19 = smov %s641_s20  ;;  %20 = sbr.rel (!%p18_p10) target bundleno = 8 (0x8), region = 77 }
  0x68   :  { %366 = vsyncpa [#allocation5], 1 }
  0x69   :  { %368 = vsyncpa [#allocation5 + $0x1], 1 }
  0x6a   :  { %369 = vsyncpa [#allocation6], 1 }
  0x6b   :  { %371 = vsyncpa [#allocation6 + $0x1], 1 }

</bundles_post_ra>
